<compile_context>
chip_gen: v5e
topology: v5e:2x2
jax: 0.10.0
libtpu: 0.0.40
codegen_flags: <defaults>
</compile_context>

<pallas_src>
import functools

import jax
import jax.numpy as jnp
from jax.experimental import pallas as pl
from jax.experimental.pallas import tpu as pltpu


def _focal_loss_body(x_ref, t_ref, a_ref, out_ref, *, gamma, s_valid, tile_s,
                     needs_mask):
    x = x_ref[...].astype(jnp.float32)              # (1, C, TS) logits tile
    t = t_ref[...]                                  # (1, 1, TS) int32 targets

    # log_softmax over the class (sublane) axis, numerically stable.
    m = jnp.max(x, axis=1, keepdims=True)           # (1, 1, TS)
    z = x - m
    lse = jnp.log(jnp.sum(jnp.exp(z), axis=1, keepdims=True))
    logp = z - lse                                  # (1, C, TS)

    # gather(1, target) via one-hot select over the class axis.
    cls = jax.lax.broadcasted_iota(jnp.int32, x.shape, 1)   # (1, C, TS)
    onehot = (cls == t).astype(jnp.float32)                 # (1, C, TS)
    logpt = jnp.sum(logp * onehot, axis=1, keepdims=True)   # (1, 1, TS)
    pt = jnp.exp(logpt)

    if a_ref is not None:
        a = a_ref[...].astype(jnp.float32)                  # (1, C, 1)
        at = jnp.sum(onehot * a, axis=1, keepdims=True)     # (1, 1, TS)
        logpt = logpt * at

    # focal modulation (1 - pt)**gamma; integer-gamma fast path uses plain
    # VALU multiplies instead of pow -> log/exp on the EUP.
    u = jnp.maximum(1.0 - pt, 0.0)
    g = float(gamma)
    if g == 0.0:
        loss = -logpt
    else:
        if g.is_integer() and 1.0 <= g <= 8.0:
            mod = u
            for _ in range(int(g) - 1):
                mod = mod * u
        else:
            mod = u ** g
        loss = -mod * logpt                                 # (1, 1, TS)

    if needs_mask:
        # exact zeroing of padded columns (global column >= original S).
        lane = jax.lax.broadcasted_iota(jnp.int32, loss.shape, 2)
        col = pl.program_id(1) * tile_s + lane
        loss = jnp.where(col < s_valid, loss, 0.0)

    # per-tile partial sum; final (tiny) reduction happens in the wrapper.
    out_ref[...] = jnp.sum(loss, axis=2, keepdims=True).reshape(1, 1, 1, 1)


def focal_loss(logits, target, *, gamma=0.0, alpha=None, size_average=True,
               block_bytes=2 << 20):
    """Pallas implementation of FocalLoss.forward.

    logits: (N, C) or (N, C, H, W) float array (NCHW, like PyTorch).
    target: (N,) or (N, H, W) int array of class indices.
    alpha:  None, float, or list of per-class weights.
    """
    # Canonicalize to class-major (B, C, S): NCHW needs only a free reshape.
    if logits.ndim > 2:
        n, c = logits.shape[0], logits.shape[1]
        x3d = logits.reshape(n, c, -1)                       # (N, C, H*W)
        tgt = target.reshape(n, 1, -1).astype(jnp.int32)     # (N, 1, H*W)
    else:
        # TODO(synk): the 2D path pays one XLA transpose to reach class-major
        # layout; a lane-major (rows-on-sublanes) kernel variant would avoid
        # the extra HBM pass for very large (M, C) inputs.
        m2, c = logits.shape
        x3d = jnp.transpose(logits, (1, 0)).reshape(1, c, m2)
        tgt = target.reshape(1, 1, -1).astype(jnp.int32)
    b, n_cls, s = x3d.shape
    m_rows = b * s                                           # valid samples

    # alpha handling (mirrors FocalLoss.__init__), padded/sliced to length C
    # so the one-hot class select reproduces alpha.gather(0, target).
    if isinstance(alpha, (float, int)) and not isinstance(alpha, bool):
        alpha_vec = jnp.array([alpha, 1.0 - alpha], dtype=jnp.float32)
    elif isinstance(alpha, (list, tuple)):
        alpha_vec = jnp.array(alpha, dtype=jnp.float32)
    elif alpha is not None:
        alpha_vec = jnp.asarray(alpha, dtype=jnp.float32).reshape(-1)
    else:
        alpha_vec = None
    use_alpha = alpha_vec is not None
    if use_alpha:
        n_a = alpha_vec.shape[0]
        if n_a < n_cls:
            alpha_vec = jnp.pad(alpha_vec, (0, n_cls - n_a))
        elif n_a > n_cls:
            alpha_vec = alpha_vec[:n_cls]

    # Tile size: lane axis carries H*W; size each block to ~block_bytes of
    # logits (512KB-2MB keeps every generation near its HBM roofline while
    # staying well under the default scoped-VMEM limit with double buffering).
    itemsize = jnp.dtype(x3d.dtype).itemsize
    bytes_per_col = max(1, n_cls * itemsize)
    cap = max(128, (block_bytes // bytes_per_col) // 128 * 128)
    s_128 = pl.cdiv(s, 128) * 128
    tile_s = int(min(s_128, cap))
    s_padded = pl.cdiv(s, tile_s) * tile_s
    pad = s_padded - s
    if pad:
        x3d = jnp.pad(x3d, ((0, 0), (0, 0), (0, pad)))
        tgt = jnp.pad(tgt, ((0, 0), (0, 0), (0, pad)))
    num_s_tiles = s_padded // tile_s
    grid = (b, num_s_tiles)
    needs_mask = pad != 0

    body = functools.partial(_focal_loss_body, gamma=float(gamma),
                             s_valid=s, tile_s=tile_s, needs_mask=needs_mask)
    if use_alpha:
        def kernel(x_ref, t_ref, a_ref, out_ref):
            body(x_ref, t_ref, a_ref, out_ref)
        alpha_3d = alpha_vec.reshape(1, n_cls, 1)
        in_specs = [
            pl.BlockSpec((1, n_cls, tile_s), lambda i, j: (i, 0, j)),
            pl.BlockSpec((1, 1, tile_s), lambda i, j: (i, 0, j)),
            pl.BlockSpec((1, n_cls, 1), lambda i, j: (0, 0, 0)),
        ]
        operands = (x3d, tgt, alpha_3d)
    else:
        def kernel(x_ref, t_ref, out_ref):
            body(x_ref, t_ref, None, out_ref)
        in_specs = [
            pl.BlockSpec((1, n_cls, tile_s), lambda i, j: (i, 0, j)),
            pl.BlockSpec((1, 1, tile_s), lambda i, j: (i, 0, j)),
        ]
        operands = (x3d, tgt)

    partials = pl.pallas_call(
        kernel,
        out_shape=jax.ShapeDtypeStruct((b, num_s_tiles, 1, 1), jnp.float32),
        grid_spec=pltpu.PrefetchScalarGridSpec(
            num_scalar_prefetch=0,
            grid=grid,
            in_specs=in_specs,
            out_specs=pl.BlockSpec((1, 1, 1, 1), lambda i, j: (i, j, 0, 0)),
        ),
        compiler_params=pltpu.CompilerParams(
            dimension_semantics=("parallel", "parallel")),
    )(*operands)

    total = jnp.sum(partials, dtype=jnp.float32)
    if size_average:
        return total / jnp.float32(m_rows)
    return total


def _focal_loss_ref(logits, target, *, gamma, alpha, size_average):
    """Pure-JAX reference mirroring the PyTorch module's forward."""
    if logits.ndim > 2:
        n, c = logits.shape[0], logits.shape[1]
        x2d = jnp.transpose(logits.reshape(n, c, -1), (0, 2, 1)).reshape(-1, c)
    else:
        x2d = logits
    t = target.reshape(-1)
    logp = jax.nn.log_softmax(x2d.astype(jnp.float32), axis=1)
    logpt = jnp.take_along_axis(logp, t[:, None], axis=1)[:, 0]
    pt = jnp.exp(logpt)
    if alpha is not None:
        if isinstance(alpha, (float, int)) and not isinstance(alpha, bool):
            a = jnp.array([alpha, 1.0 - alpha], dtype=jnp.float32)
        else:
            a = jnp.array(alpha, dtype=jnp.float32)
        logpt = logpt * a[t]
    loss = -1.0 * (1.0 - pt) ** gamma * logpt
    return loss.mean() if size_average else loss.sum()


if __name__ == "__main__":
    key = jax.random.PRNGKey(0)
    k1, k2 = jax.random.split(key)

    N, C, H, W = 2, 4, 16, 16          # NCHW, like the PyTorch module
    gamma = 2.0
    alpha = [0.1, 0.2, 0.3, 0.4]       # per-class weights (len == C)

    logits = jax.random.normal(k1, (N, C, H, W), dtype=jnp.float32)
    target = jax.random.randint(k2, (N, H, W), 0, C, dtype=jnp.int32)

    # alpha-weighted mean
    loss = focal_loss(logits, target, gamma=gamma, alpha=alpha,
                      size_average=True)
    loss = jax.block_until_ready(loss)
    ref = _focal_loss_ref(logits, target, gamma=gamma, alpha=alpha,
                          size_average=True)
    assert jnp.allclose(loss, ref, rtol=1e-5, atol=1e-5), (loss, ref)

    # no-alpha sum path (exercises the alpha-free kernel variant)
    loss2 = focal_loss(logits, target, gamma=0.0, alpha=None,
                       size_average=False)
    loss2 = jax.block_until_ready(loss2)
    ref2 = _focal_loss_ref(logits, target, gamma=0.0, alpha=None,
                           size_average=False)
    assert jnp.allclose(loss2, ref2, rtol=1e-5, atol=1e-4), (loss2, ref2)

    print("KERNEL_OK")
</pallas_src>

<mosaic_0001>
module attributes {stable_mosaic.version = 11 : i64} {
  func.func @kernel(%arg0: i32, %arg1: i32, %arg2: memref<1x4x256xf32, #tpu.memory_space<vmem>>, %arg3: memref<1x1x256xi32, #tpu.memory_space<vmem>>, %arg4: memref<1x4x1xf32, #tpu.memory_space<vmem>>, %arg5: memref<1x1x1x1xf32, #tpu.memory_space<vmem>>) attributes {dimension_semantics = [#tpu.dimension_semantics<parallel>, #tpu.dimension_semantics<parallel>], iteration_bounds = array<i64: 2, 1>, scalar_prefetch = 0 : i64, scratch_operands = 0 : i64, tpu.core_type = #tpu.core_type<tc>, window_params = [{transform_indices = @transform_0, window_bounds = array<i64: 1, 4, 256>}, {transform_indices = @transform_1, window_bounds = array<i64: 1, 1, 256>}, {pipeline_mode = #tpu.pipeline_mode<synchronous>, transform_indices = @transform_2, window_bounds = array<i64: 1, 4, 1>}, {transform_indices = @transform_3, window_bounds = array<i64: 1, 1, 1, 1>}]} {
    %c0 = arith.constant 0 : index
    %c0_0 = arith.constant 0 : index
    %c0_1 = arith.constant 0 : index
    %0 = vector.load %arg2[%c0, %c0_0, %c0_1] : memref<1x4x256xf32, #tpu.memory_space<vmem>>, vector<1x4x256xf32>
    %c0_2 = arith.constant 0 : index
    %c0_3 = arith.constant 0 : index
    %c0_4 = arith.constant 0 : index
    %1 = vector.load %arg3[%c0_2, %c0_3, %c0_4] : memref<1x1x256xi32, #tpu.memory_space<vmem>>, vector<1x1x256xi32>
    %cst = arith.constant dense<0xFF800000> : vector<1x256xf32>
    %2 = vector.multi_reduction <maximumf>, %0, %cst [1] : vector<1x4x256xf32> to vector<1x256xf32>
    %3 = vector.shape_cast %2 : vector<1x256xf32> to vector<1x1x256xf32>
    %4 = vector.broadcast %3 : vector<1x1x256xf32> to vector<1x4x256xf32>
    %5 = arith.subf %0, %4 : vector<1x4x256xf32>
    %6 = math.exp %5 : vector<1x4x256xf32>
    %cst_5 = arith.constant dense<0.000000e+00> : vector<1x256xf32>
    %7 = vector.multi_reduction <add>, %6, %cst_5 [1] : vector<1x4x256xf32> to vector<1x256xf32>
    %8 = vector.shape_cast %7 : vector<1x256xf32> to vector<1x1x256xf32>
    %9 = math.log %8 : vector<1x1x256xf32>
    %10 = vector.broadcast %9 : vector<1x1x256xf32> to vector<1x4x256xf32>
    %11 = arith.subf %5, %10 : vector<1x4x256xf32>
    %12 = tpu.iota {dimensions = array<i32: 1>} : vector<1x4x256xi32>
    %13 = vector.broadcast %1 : vector<1x1x256xi32> to vector<1x4x256xi32>
    %14 = arith.cmpi eq, %12, %13 : vector<1x4x256xi32>
    %15 = arith.extui %14 : vector<1x4x256xi1> to vector<1x4x256xi32>
    %16 = arith.sitofp %15 : vector<1x4x256xi32> to vector<1x4x256xf32>
    %17 = arith.mulf %11, %16 : vector<1x4x256xf32>
    %cst_6 = arith.constant dense<0.000000e+00> : vector<1x256xf32>
    %18 = vector.multi_reduction <add>, %17, %cst_6 [1] : vector<1x4x256xf32> to vector<1x256xf32>
    %19 = vector.shape_cast %18 : vector<1x256xf32> to vector<1x1x256xf32>
    %20 = math.exp %19 : vector<1x1x256xf32>
    %c0_7 = arith.constant 0 : index
    %c0_8 = arith.constant 0 : index
    %c0_9 = arith.constant 0 : index
    %21 = vector.load %arg4[%c0_7, %c0_8, %c0_9] : memref<1x4x1xf32, #tpu.memory_space<vmem>>, vector<1x4x1xf32>
    %22 = vector.broadcast %21 : vector<1x4x1xf32> to vector<1x4x256xf32>
    %23 = arith.mulf %16, %22 : vector<1x4x256xf32>
    %cst_10 = arith.constant dense<0.000000e+00> : vector<1x256xf32>
    %24 = vector.multi_reduction <add>, %23, %cst_10 [1] : vector<1x4x256xf32> to vector<1x256xf32>
    %25 = vector.shape_cast %24 : vector<1x256xf32> to vector<1x1x256xf32>
    %26 = arith.mulf %19, %25 : vector<1x1x256xf32>
    %cst_11 = arith.constant 1.000000e+00 : f32
    %27 = vector.broadcast %cst_11 : f32 to vector<1x1x256xf32>
    %28 = arith.subf %27, %20 : vector<1x1x256xf32>
    %cst_12 = arith.constant 0.000000e+00 : f32
    %29 = vector.broadcast %cst_12 : f32 to vector<1x1x256xf32>
    %30 = arith.maximumf %28, %29 : vector<1x1x256xf32>
    %31 = arith.mulf %30, %30 : vector<1x1x256xf32>
    %cst_13 = arith.constant 0.000000e+00 : f32
    %32 = vector.broadcast %cst_13 : f32 to vector<1x1x256xf32>
    %33 = arith.subf %32, %31 : vector<1x1x256xf32>
    %34 = arith.mulf %33, %26 : vector<1x1x256xf32>
    %cst_14 = arith.constant dense<0.000000e+00> : vector<1x1xf32>
    %35 = vector.multi_reduction <add>, %34, %cst_14 [2] : vector<1x1x256xf32> to vector<1x1xf32>
    %36 = vector.shape_cast %35 : vector<1x1xf32> to vector<1x1x1xf32>
    %37 = vector.shape_cast %36 : vector<1x1x1xf32> to vector<1x1x1x1xf32>
    %c0_15 = arith.constant 0 : index
    %c0_16 = arith.constant 0 : index
    %c0_17 = arith.constant 0 : index
    %c0_18 = arith.constant 0 : index
    %38 = vector.load %arg5[%c0_15, %c0_16, %c0_17, %c0_18] : memref<1x1x1x1xf32, #tpu.memory_space<vmem>>, vector<1x1x1x1xf32>
    tpu.vector_store %arg5[%c0_15, %c0_16, %c0_17, %c0_18], %37 {strides = array<i32>} : memref<1x1x1x1xf32, #tpu.memory_space<vmem>>, vector<1x1x1x1xf32>,
    return
  }
  func.func @transform_0(%arg0: i32, %arg1: i32) -> (i32, i32, i32) {
    %c0_i32 = arith.constant 0 : i32
    %c0_i32_0 = arith.constant 0 : i32
    return %arg0, %c0_i32, %arg1 : i32, i32, i32
  }
  func.func @transform_1(%arg0: i32, %arg1: i32) -> (i32, i32, i32) {
    %c0_i32 = arith.constant 0 : i32
    %c0_i32_0 = arith.constant 0 : i32
    return %arg0, %c0_i32, %arg1 : i32, i32, i32
  }
  func.func @transform_2(%arg0: i32, %arg1: i32) -> (i32, i32, i32) {
    %c0_i32 = arith.constant 0 : i32
    %c0_i32_0 = arith.constant 0 : i32
    %c0_i32_1 = arith.constant 0 : i32
    %c0_i32_2 = arith.constant 0 : i32
    return %c0_i32, %c0_i32_0, %c0_i32_1 : i32, i32, i32
  }
  func.func @transform_3(%arg0: i32, %arg1: i32) -> (i32, i32, i32, i32) {
    %c0_i32 = arith.constant 0 : i32
    %c0_i32_0 = arith.constant 0 : i32
    %c0_i32_1 = arith.constant 0 : i32
    return %arg0, %arg1, %c0_i32, %c0_i32_0 : i32, i32, i32, i32
  }
}

</mosaic_0001>

<bundles_post_ra>
// kernel: tpu_custom_call.1
= control target key start
LH: loop header
LB: loop body
LE: loop exit
PB: predicated region body
PF: predicated region fallthrough
CT: control target
= control target key end

     0   :  { %8 = vsyncpa [#allocation3], 0  ;;  %s776_s0 = inlined_call_operand.hbm [shape: f32[2,4,256], index: 0, kind: input, shape index: {}]   ;;  %s777_s1 = inlined_call_operand.vmem [shape: s32[2,1,256], index: 1, kind: input, shape index: {}]   ;;  %s778_s2 = inlined_call_operand.vmem [shape: f32[1,4,1], index: 2, kind: input, shape index: {}]   ;;  %s779_s3 = inlined_call_operand.vmem [shape: f32[2,1,1,1], index: 3, kind: output, shape index: {}]  }
   0x1   :  { %10 = vsyncpa [#allocation3 + $0x1], 0  ;;  %s667_s12 = smov 0   ;;  %s669_s13 = smov 0  }
   0x2   :  { %s671_s14 = smov 0   ;;  %s673_s15 = smov 0  }
   0x3   :  { %s675_s16 = smov 0   ;;  %s677_s17 = smov 0  }
   0x4 LB: > { %s480_s18 = sadd.s32 4294967295, %s643_s17   ;;  %s28_s19 = sadd.s32 1, %s639_s16  ;;  %s643_s17 = sphi %s677_s17, %s16_s17   ;;  %s639_s16 = sphi %s675_s16, %s786_s16   ;;  %s635_s15 = sphi %s673_s15, %s785_s15   ;;  %s631_s14 = sphi %s671_s14, %s784_s14   ;;  %s627_s13 = sphi %s669_s13, %s783_s13   ;;  %s623_s12 = sphi %s667_s12, %s782_s12  }
   0x5   : > { %p30_p0 = scmp.ge.s32.totalorder %s28_s19, 2  ;;  %s37_s20 = sadd.s32 1, %s631_s14 }
   0x6   : > { %p44_p1 = scmp.ne.s32.totalorder %s631_s14, %s627_s13  ;;  %p45_p2 = scmp.eq.s32.totalorder %s643_s17, 0 }
   0x7   : > { %s788_s19 = smov (%p30_p0, %s28_s19), 0  ;;  %p50_p4 = scmp.ne.s32.totalorder %s627_s13, %s623_s12 }
   0x8   : > { %p703_p3 = por %p45_p2, %p44_p1  ;;  %s32_s22 = ssub.s32 %s639_s16, %s788_s19 }
   0x9   : > { %p51_p5 = scmp.eq.s32.totalorder %s480_s18, 0  ;;  %p35_p6 = scmp.eq.s32.totalorder %s32_s22, 0 }
   0xa   : > { %p501_p8 = scmp.lt.s32.totalorder %s643_s17, 2  ;;  %s154_s25 = sand.u32 1, %s631_s14  }
   0xb   : > { %p710_p7 = por %p51_p5, %p50_p4  ;;  %s494_s26 = sshll.u32 %s639_s16, 3 }
   0xc   : > { %s716_s24 = scalar_select %p35_p6, %s631_s14, %s37_s20  }
   0xd   : > { %s484_s27 = sshll.u32 %s154_s25, 3  ;;  %s165_s30 = scalar_lea.hbm %s776_s0, %s494_s26 }
   0xe   : > { %s167_s4 = sshll.u32 %s165_s30, 4  ;;  %s158_s5 = scalar_lea.vmem [#allocation2], %s484_s27  ;;  %s168_s4 = int_to_ptr.hbm [resolvable:$true] %s167_s4 }
   0xf   : > { %s169_s6 = sshll.u32 %s158_s5, 4  ;;  %p498_p9 = pnand %p501_p8, %p703_p3  ;;  %s170_s6 = int_to_ptr.vmem [resolvable:$true] %s169_s6 }
  0x10   : > { %p487_p10 = scmp.ge.s32.totalorder %s643_s17, 1  ;;  %p186_p11 = scmp.lt.s32.totalorder %s643_s17, 3 }
  0x11   : > { %s155_s7 = scalar_lea.sflag [#allocation3], %s154_s25 }
  0x12   : > { %500 = dma.hbm_to_vmem [thread:$0]  (!%p498_p9), %s168_s4, 128, %s170_s6, %s155_s7  }
  0x13   : > { %p187_p12 = pnand %p487_p10, %p186_p11 }
  0x14   : > { %s192_s8 = sand.u32 (!%p187_p12), 1, %s627_s13  }
  0x15   : > { %190 = sbr.rel (%p187_p12) target bundleno = 282 (0x11a), region = 32  ;;  %s488_s9 = sshll.u32 (!%p187_p12), %s192_s8, 3 }
  0x16   : > { %s193_s10 = scalar_lea.sflag (!%p187_p12), [#allocation3], %s192_s8  ;;  %s196_s11 = scalar_lea.vmem (!%p187_p12), [#allocation2], %s488_s9 }
  0x1a   : > { %618 = dma.done.wait (%p710_p7), %s193_s10, 128  }
  0x1b   : > { %620 = vsyncadd (%p710_p7), %s193_s10, 4294967168  ;;  %v645_v0 = vmov 0   ;;  %v346_v1 = vld [vmem:[%s778_s2] sm:$0xf]  ;;  %v245_v2 = vld [vmem:[%s196_s11] sm:$0xff]  ;;  %vm253_vm0 = vcmask 1043456   ;;  %v306_v34 = vlaneseq }
  0x1c   : > { %552 = vset.pattern.permute.xlu0 %v645_v0  ;;  %248 = vst [vmem:[#allocation1] ss:$2 sm:$0xff] %v245_v2  ;;  %p231_p13 = scmp.lt.s32.totalorder %s635_s15, 1  ;;  %v646_v45 = vmov 0.0   ;;  %vm383_vm3 = vcmask 0  }
  0x1d   : > { %349 = vperm.xlu0 %552, %v346_v1   ;;  %v307_v40 = vshrl.u32 %v306_v34, 7 }
  0x1e   : > { %s790_s15 = smov (!%p231_p13, %s635_s15), 1 }
  0x1f   : > { %s489_s20 = sshll.u32 %s790_s15, 1  ;;  %s244_s27 = scalar_lea.vmem %s779_s3, %s790_s15 }
  0x20   : > { %s237_s23 = scalar_lea.vmem %s777_s1, %s489_s20 }
  0x21   : > { %v246_v37 = vld [vmem:[%s237_s23] sm:$0x3] }
  0x22   : > { %v309_v43 = vperm.slane %v246_v37, 1  ;;  %v308_v44 = vperm.slane %v246_v37, 0 }
  0x23   : > { %v249_v3 = vld.sshfl [vmem:[#allocation1] sm:$0xff pattern:$0x75316420]  ;;  %v250_v4 = vld.sshfl [vmem:[#allocation1 + $0x8] sm:$0xff pattern:$0x75316420] }
  0x24   : > { %v254_v5 = vsel %vm253_vm0, %v249_v3, -inf  ;;  %v261_v6 = vsel %vm253_vm0, %v250_v4, -inf  ;;  %vm311_vm1 = vcmp.eq.s32.totalorder %v307_v40, %v309_v43  ;;  %vm310_vm2 = vcmp.eq.s32.totalorder %v307_v40, %v308_v44 }
  0x25   : > { %v255_v7 = vrot.slane %v254_v5, 4  ;;  %v262_v8 = vrot.slane %v261_v6, 4  ;;  %v491_v46 = vsel %vm311_vm1, 1.0, %v646_v45  ;;  %v490_v52 = vsel %vm310_vm2, 1.0, %v646_v45 }
  0x26   : > { %v318_v51 = vrot.slane %v491_v46, 4 }
  0x27   : > { %v256_v9 = vmax.f32 %v254_v5, %v255_v7  ;;  %v263_v10 = vmax.f32 %v261_v6, %v262_v8 }
  0x28   : > { %v319_v55 = vsel %vm253_vm0, %v490_v52, %v318_v51 }
  0x29   : > { %v257_v11 = vrot.slane %v256_v9, 2  ;;  %v264_v12 = vrot.slane %v263_v10, 2 }
  0x2b   : > { %v258_v13 = vmax.f32 %v256_v9, %v257_v11  ;;  %v265_v14 = vmax.f32 %v263_v10, %v264_v12 }
  0x2d   : > { %v259_v15 = vrot.slane %v258_v13, 1  ;;  %v266_v16 = vrot.slane %v265_v14, 1 }
  0x2f   : > { %v260_v17 = vmax.f32 %v258_v13, %v259_v15  ;;  %v267_v18 = vmax.f32 %v265_v14, %v266_v16 }
  0x31   : > { %v270_v19 = vrot.slane %v267_v18, 4 }
  0x33   : > { %v271_v20 = vsel %vm253_vm0, %v260_v17, %v270_v19 }
  0x34   : > { %v273_v21 = vsub.f32 %v245_v2, %v271_v20 }
  0x36   : > { %v274_v22 = vmul.f32 1.442695, %v273_v21 }
  0x38   : > { %553 = vpow2.f32 %v274_v22 }
  0x3e   : > { %v554_v23 = vpop.eup %553 }
  0x3f   : > { %277 = vst [vmem:[#allocation1] ss:$2 sm:$0xff] %v554_v23 }
  0x46   : > { %v278_v24 = vld.sshfl [vmem:[#allocation1] sm:$0xff pattern:$0x75316420]  ;;  %v279_v25 = vld.sshfl [vmem:[#allocation1 + $0x8] sm:$0xff pattern:$0x75316420] }
  0x47   : > { %v282_v26 = vsel %vm253_vm0, %v278_v24, 0.0  ;;  %v289_v27 = vsel %vm253_vm0, %v279_v25, 0.0 }
  0x48   : > { %v283_v28 = vrot.slane %v282_v26, 4  ;;  %v290_v29 = vrot.slane %v289_v27, 4 }
  0x4a   : > { %v284_v30 = vadd.f32 %v283_v28, %v282_v26  ;;  %v291_v31 = vadd.f32 %v290_v29, %v289_v27 }
  0x4c   : > { %v285_v32 = vrot.slane %v284_v30, 2  ;;  %v292_v33 = vrot.slane %v291_v31, 2 }
  0x4e   : > { %v286_v35 = vadd.f32 %v285_v32, %v284_v30  ;;  %v293_v36 = vadd.f32 %v292_v33, %v291_v31 }
  0x50   : > { %v287_v38 = vrot.slane %v286_v35, 1  ;;  %v294_v39 = vrot.slane %v293_v36, 1 }
  0x52   : > { %v288_v41 = vadd.f32 %v287_v38, %v286_v35  ;;  %v295_v42 = vadd.f32 %v294_v39, %v293_v36 }
  0x54   : > { %555 = vlog2.f32 %v288_v41 }
  0x55   : > { %557 = vlog2.f32 %v295_v42 }
  0x5a   : > { %v556_v47 = vpop.eup %555 }
  0x5b   : > { %v558_v48 = vpop.eup %557  ;;  %v297_v49 = vmul.f32 0.6931472, %v556_v47 }
  0x5c   : > { %v299_v50 = vmul.f32 0.6931472, %v558_v48 }
  0x5e   : > { %v302_v53 = vrot.slane %v299_v50, 4 }
  0x60   : > { %v303_v54 = vsel %vm253_vm0, %v297_v49, %v302_v53 }
  0x61   : > { %v305_v56 = vsub.f32 %v273_v21, %v303_v54 }
  0x63   : > { %v321_v57 = vmul.f32 %v319_v55, %v305_v56 }
  0x65   : > { %323 = vst [vmem:[#allocation1] ss:$2 sm:$0xff] %v321_v57 }
  0x6c   : > { %v324_v58 = vld.sshfl [vmem:[#allocation1] sm:$0xff pattern:$0x75316420]  ;;  %v325_v59 = vld.sshfl [vmem:[#allocation1 + $0x8] sm:$0xff pattern:$0x75316420] }
  0x6d   : > { %v328_v60 = vsel %vm253_vm0, %v324_v58, 0.0  ;;  %v335_v61 = vsel %vm253_vm0, %v325_v59, 0.0 }
  0x6e   : > { %v329_v62 = vrot.slane %v328_v60, 4  ;;  %v336_v63 = vrot.slane %v335_v61, 4 }
  0x70   : > { %v330_v0 = vadd.f32 %v329_v62, %v328_v60  ;;  %v337_v1 = vadd.f32 %v336_v63, %v335_v61 }
  0x72   : > { %v331_v2 = vrot.slane %v330_v0, 2  ;;  %v338_v3 = vrot.slane %v337_v1, 2 }
  0x74   : > { %v332_v4 = vadd.f32 %v331_v2, %v330_v0  ;;  %v339_v5 = vadd.f32 %v338_v3, %v337_v1 }
  0x76   : > { %v333_v6 = vrot.slane %v332_v4, 1  ;;  %v340_v7 = vrot.slane %v339_v5, 1 }
  0x78   : > { %v334_v8 = vadd.f32 %v333_v6, %v332_v4  ;;  %v341_v9 = vadd.f32 %v340_v7, %v339_v5 }
  0x7a   : > { %v342_v10 = vmul.f32 1.442695, %v334_v8  ;;  %v344_v11 = vmul.f32 1.442695, %v341_v9 }
  0x7c   : > { %559 = vpow2.f32 %v342_v10 }
  0x7d   : > { %561 = vpow2.f32 %v344_v11 }
  0x82   : > { %v560_v12 = vpop.eup %559 }
  0x83   : > { %v562_v13 = vpop.eup %561  ;;  %v370_v17 = vsub.f32 1.0, %v560_v12 }
  0x84   : > { %v371_v18 = vsub.f32 1.0, %v562_v13 }
  0x85   : > { %v372_v25 = vmax.f32 %v370_v17, 0.0 }
  0x86   : > { %v373_v26 = vmax.f32 %v371_v18, 0.0 }
  0x87   : > { %v374_v31 = vmul.f32 %v372_v25, %v372_v25 }
  0x88   : > { %v375_v32 = vmul.f32 %v373_v26, %v373_v26 }
  0x89   : > { %v376_v37 = vsub.f32 0.0, %v374_v31 }
  0x8a   : > { %v377_v38 = vsub.f32 0.0, %v375_v32 }
  0x8f   : > { %v350_v14 = vpop.permute.xlu0 %349 }
  0x90   : > { %v352_v15 = vmul.f32 %v490_v52, %v350_v14  ;;  %v353_v16 = vmul.f32 %v491_v46, %v350_v14 }
  0x92   : > { %v354_v19 = vsel %vm253_vm0, %v352_v15, 0.0  ;;  %v361_v20 = vsel %vm253_vm0, %v353_v16, 0.0 }
  0x93   : > { %v355_v21 = vrot.slane %v354_v19, 4  ;;  %v362_v22 = vrot.slane %v361_v20, 4 }
  0x95   : > { %v356_v23 = vadd.f32 %v355_v21, %v354_v19  ;;  %v363_v24 = vadd.f32 %v362_v22, %v361_v20 }
  0x97   : > { %v357_v27 = vrot.slane %v356_v23, 2  ;;  %v364_v28 = vrot.slane %v363_v24, 2 }
  0x99   : > { %v358_v29 = vadd.f32 %v357_v27, %v356_v23  ;;  %v365_v30 = vadd.f32 %v364_v28, %v363_v24 }
  0x9b   : > { %v359_v33 = vrot.slane %v358_v29, 1  ;;  %v366_v34 = vrot.slane %v365_v30, 1 }
  0x9d   : > { %v360_v35 = vadd.f32 %v359_v33, %v358_v29  ;;  %v367_v36 = vadd.f32 %v366_v34, %v365_v30 }
  0x9f   : > { %v368_v39 = vmul.f32 %v360_v35, %v334_v8  ;;  %v369_v40 = vmul.f32 %v367_v36, %v341_v9 }
  0xa1   : > { %v378_v41 = vmul.f32 %v376_v37, %v368_v39  ;;  %v379_v42 = vmul.f32 %v377_v38, %v369_v40 }
  0xa3   : > { %v380_v43 = vadd.f32 %v379_v42, %v378_v41 }
  0xa5   : > { %381 = vadd.xlane.f32.xlu0 %v380_v43 }
 0x118   : > { %v382_v44 = vpop.xlane.xlu0 %381 }
 0x119   : > { %384 = vst.msk [vmem:[%s244_s27] sm:$0x1] %vm383_vm3, %v382_v44 }
 0x11a PF: > { %s16_s17 = sadd.s32 1, %s643_s17   ;;  %s782_s12 = smov %s627_s13 }
 0x11b   : > { %p13_p0 = scmp.ge.s32.totalorder %s16_s17, 4   ;;  %s783_s13 = smov %s631_s14 }
 0x11c   : > { %s784_s14 = smov %s716_s24  ;;  %s785_s15 = smov %s639_s16 }
 0x11d   : > { %s786_s16 = smov %s788_s19  ;;  %15 = sbr.rel (!%p13_p0) target bundleno = 4 (0x4), region = 75 }
 0x122   :  { %408 = vsyncpa [#allocation3], 1 }
 0x123   :  { %410 = vsyncpa [#allocation3 + $0x1], 1 }

</bundles_post_ra>
